<compile_context>
chip_gen: v6e
topology: v6e:2x2x1
jax: 0.10.0
libtpu: 0.0.40
codegen_flags: <defaults>
</compile_context>

<pallas_src>
import numpy as np
import jax
import jax.numpy as jnp
from jax.experimental import pallas as pl
from jax.experimental.pallas import tpu as pltpu

LEVELS = 3
FILT_LEN = 8
LANE_TARGET = 128   # minimum lane width; widened toward 512 when profitable

# pywt 'db4' filters (deterministic constants, no pywt / file dependency).
_DB4_REC_LO = np.array([
    0.2303778133088965, 0.7148465705529157, 0.6308807679298589,
    -0.027983769416859854, -0.18703481171909309, 0.030841381835560763,
    0.0328830116668852, -0.010597401785069032], dtype=np.float64)
_DB4_REC_HI = np.array([_DB4_REC_LO[FILT_LEN - 1 - k] * (-1.0) ** k
                        for k in range(FILT_LEN)], dtype=np.float64)
_DEC_LO = _DB4_REC_LO[::-1].copy()
_DEC_HI = _DB4_REC_HI[::-1].copy()
# pytorch_wavelets prep_filt_afb1d time-reverses the decomposition filters and
# then F.conv2d cross-correlates with them:
_H0_XCORR = _DEC_LO[::-1].copy()   # == rec_lo
_H1_XCORR = _DEC_HI[::-1].copy()   # == rec_hi


# ---------------- operator (matrix) construction: pure host-side setup ----------------

def _reflect(x, minx, maxx):
    # exact copy of pytorch_wavelets.lowlevel.reflect semantics
    rng = maxx - minx
    double_rng = 2.0 * rng
    mod = np.fmod(x - minx, double_rng)
    normed = np.where(mod < 0, mod + double_rng, mod)
    out = np.where(normed >= rng, double_rng - normed, normed) + minx
    return out.astype(np.int64)


def _symmetric_pad_indices(n, p_left, p_right):
    return _reflect(np.arange(-p_left, n + p_right, dtype=np.float64), -0.5, n - 0.5)


def _afb_matrices(n):
    """(outsize x n) lowpass / highpass analysis operators for one DWT level."""
    L = FILT_LEN
    outsize = (n + L - 1) // 2                 # pywt.dwt_coeff_len(n, L, 'symmetric')
    p = 2 * (outsize - 1) - n + L
    idx = _symmetric_pad_indices(n, p // 2, (p + 1) // 2)
    n_pad = idx.shape[0]
    P = np.zeros((n_pad, n), dtype=np.float64)
    P[np.arange(n_pad), idx] = 1.0
    C_lo = np.zeros((outsize, n_pad), dtype=np.float64)
    C_hi = np.zeros((outsize, n_pad), dtype=np.float64)
    for k in range(outsize):
        for t in range(L):
            C_lo[k, 2 * k + t] += _H0_XCORR[t]
            C_hi[k, 2 * k + t] += _H1_XCORR[t]
    return C_lo @ P, C_hi @ P, outsize


def _resize_matrix(cur, target):
    """Linear operator matching _resize_to_target_length (F.interpolate)."""
    if cur == target:
        return np.eye(cur, dtype=np.float64)
    if cur > target:  # mode='area' == adaptive_avg_pool1d
        M = np.zeros((target, cur), dtype=np.float64)
        for i in range(target):
            s = (i * cur) // target
            e = -((-(i + 1) * cur) // target)
            M[i, s:e] = 1.0 / (e - s)
        return M
    # mode='linear', align_corners=False (not reached for these DWT coeff lengths).
    M = np.zeros((target, cur), dtype=np.float64)
    scale = cur / target
    for i in range(target):
        src = max((i + 0.5) * scale - 0.5, 0.0)
        x0 = int(np.floor(src))
        x1 = min(x0 + 1, cur - 1)
        w = src - x0
        M[i, x0] += 1.0 - w
        M[i, x1] += w
    return M


def _round_up(n, m):
    return ((n + m - 1) // m) * m


def build_folded_operators(seq_len, levels):
    """Fold (DWT cascade + resize) into one dense (T_i, S) operator per scale (f64)."""
    a_lo, a_hi, lens = [], [], []
    n = seq_len
    for _ in range(levels):
        Alo, Ahi, n = _afb_matrices(n)
        a_lo.append(Alo)
        a_hi.append(Ahi)
        lens.append(n)
    targets = [seq_len // 2 ** levels] + [seq_len // 2 ** (levels - i) for i in range(levels)]
    # cumulative lowpass cascades: cums[j] = A_lo[j-1] @ ... @ A_lo[0], cums[0] = I
    cums = [np.eye(seq_len, dtype=np.float64)]
    for j in range(levels):
        cums.append(a_lo[j] @ cums[-1])
    scale_ops = [cums[levels]] + [a_hi[j] @ cums[j] for j in range(levels)]
    scale_lens = [lens[-1]] + lens
    eff = [_resize_matrix(scale_lens[i], targets[i]) @ scale_ops[i]
           for i in range(levels + 1)]
    return eff, targets


# ---------------------------------- Pallas kernel ----------------------------------

def _make_kernel(n_scales, offsets, row_pads, lanes, merged):
    def kernel(x_ref, e_ref, w_ref, b_ref, out_ref, acc_ref):
        k = pl.program_id(1)

        @pl.when(k == 0)
        def _init():
            acc_ref[...] = jnp.zeros_like(acc_ref)

        # K-tiled analysis matmul: bf16 operands straight to the MXU, f32 VMEM accum.
        acc_ref[...] += jnp.dot(e_ref[...], x_ref[...].astype(jnp.bfloat16),
                                preferred_element_type=jnp.float32)

        @pl.when(k == pl.num_programs(1) - 1)
        def _finalize():
            y16 = acc_ref[...].astype(jnp.bfloat16)
            if merged:
                # One wide projection matmul (M = r_total keeps the systolic array full),
                # then static, 128-aligned row/column slices per scale.
                p = jnp.dot(y16, w_ref[...], preferred_element_type=jnp.float32)
                for i in range(n_scales):
                    lo, hi = offsets[i], offsets[i] + row_pads[i]
                    out_ref[lo:hi, :] = p[lo:hi, i * lanes:(i + 1) * lanes] + b_ref[i]
            else:
                # Per-scale path for very large r_total (avoids the n_scales x FLOP waste).
                for i in range(n_scales):
                    lo, hi = offsets[i], offsets[i] + row_pads[i]
                    p = jnp.dot(y16[lo:hi, :], w_ref[:, i * lanes:(i + 1) * lanes],
                                preferred_element_type=jnp.float32)
                    out_ref[lo:hi, :] = p + b_ref[i]
    return kernel


def wavelet_hierarchical_decompose(x, weights, biases, levels=LEVELS):
    """x: (B, S, C) float32. Returns list of (B, T_i, C) float32 arrays."""
    B, S, C = x.shape
    assert S >= 2 ** levels
    # TODO(synk): replicate-padding branch for seq_len < 2**levels and the
    # try/except avg-pool fallback path are host-side control flow; not translated.

    n_scales = levels + 1
    eff, targets = build_folded_operators(S, levels)

    # ---- lane packing: pad channels to a 128-friendly width, then pack batches ----
    if C >= LANE_TARGET:
        C_pad = _round_up(C, LANE_TARGET)
    else:
        C_pad = 1
        while C_pad < C:
            C_pad *= 2                       # power of two <= 128 -> divides 128

    def _steps(bt_):
        return -(-B // bt_)

    bt = max(1, LANE_TARGET // C_pad)        # batches/step for a 128-lane base
    # Widen toward 512 lanes, but never drop below 2 parallel steps (v7x has two
    # TensorCores) and never widen into pure batch padding.
    while bt * 2 * C_pad <= 512:
        if _steps(bt * 2) == _steps(bt):
            break
        if _steps(bt) >= 2 and _steps(bt * 2) < 2:
            break
        bt *= 2
    lanes = bt * C_pad
    n_chunks = _steps(bt)
    b_pad = n_chunks * bt

    # ---- K tiling of the contraction axis S (streams E for large S) ----
    if S <= 1024:
        tk, n_k, S_pad = S, 1, S
    else:
        tk = 512
        S_pad = _round_up(S, tk)
        n_k = S_pad // tk

    # ---- stacked bf16 analysis operator (rows padded to multiples of 8) ----
    row_pads = [_round_up(t, 8) for t in targets]
    offsets = [int(v) for v in np.cumsum([0] + row_pads[:-1])]
    r_total = int(sum(row_pads))
    E = np.zeros((r_total, S_pad), dtype=np.float32)
    for i in range(n_scales):
        E[offsets[i]:offsets[i] + targets[i], :S] = eff[i]
    e_dev = jnp.asarray(E, dtype=jnp.bfloat16)

    # ---- block-diagonal per-scale projection weights, concatenated column-wise ----
    w_blocks = []
    for w in weights:
        Wp = np.zeros((C_pad, C_pad), dtype=np.float64)
        Wp[:C, :C] = np.asarray(w, np.float64).T
        w_blocks.append(np.kron(np.eye(bt, dtype=np.float64), Wp))
    W_all = np.concatenate(w_blocks, axis=1).astype(np.float32)   # (lanes, n_scales*lanes)
    w_dev = jnp.asarray(W_all, dtype=jnp.bfloat16)

    b_rows = []
    for b in biases:
        bp = np.zeros((C_pad,), dtype=np.float32)
        bp[:C] = np.asarray(b, np.float32)
        b_rows.append(np.tile(bp, bt)[None, :])
    b_dev = jnp.asarray(np.stack(b_rows))                          # (n_scales, 1, lanes) f32

    # ---- lane-pack the input: (B, S, C) -> (S_pad, b_pad*C_pad) ----
    x_pad = jnp.zeros((b_pad, S, C_pad), jnp.float32).at[:B, :, :C].set(x.astype(jnp.float32))
    x_packed = jnp.transpose(x_pad, (1, 0, 2)).reshape(S, b_pad * C_pad)
    if S_pad != S:
        x_packed = jnp.zeros((S_pad, b_pad * C_pad), jnp.float32).at[:S].set(x_packed)

    merged = r_total <= 512
    kernel = _make_kernel(n_scales, offsets, row_pads, lanes, merged)

    # ---- cost estimate + generation-aware VMEM budget ----
    analysis_flops = 2 * r_total * S_pad * (n_chunks * lanes)
    proj_flops = (2 * n_chunks * r_total * lanes * (n_scales * lanes) if merged
                  else 2 * n_chunks * r_total * lanes * lanes)
    bytes_accessed = int(x_packed.size * 4 + E.size * 2 + W_all.size * 2
                         + b_dev.size * 4 + r_total * n_chunks * lanes * 4)
    cost = pl.CostEstimate(flops=int(analysis_flops + proj_flops),
                           transcendentals=0, bytes_accessed=bytes_accessed)

    needed = (r_total * tk * 2 * (1 if n_k == 1 else 2)       # E tile(s), bf16
              + tk * lanes * 4 * 2                            # x tile, double-buffered
              + lanes * n_scales * lanes * 2                  # W_all, bf16
              + n_scales * lanes * 4                          # bias
              + r_total * lanes * 4 * 2                       # output tile
              + r_total * lanes * 4)                          # f32 accumulator
    try:
        phys = int(pltpu.get_tpu_info().vmem_capacity_bytes)
    except Exception:
        phys = 128 * 1024 * 1024
    cap = (phys * 7) // 8                                     # leave headroom (v7x: ~56 MiB)
    vmem_limit = int(min(cap, max(32 * 1024 * 1024, int(needed * 1.3) + (4 << 20))))

    def _call(fancy):
        x_spec = pl.BlockSpec((tk, lanes), lambda g, k: (k, g))
        if fancy:
            # single-buffer the grid-invariant packed constants (pure VMEM savings)
            if n_k == 1:
                e_spec = pl.BlockSpec((r_total, tk), lambda g, k: (0, k),
                                      pipeline_mode=pl.Buffered(1))
            else:
                e_spec = pl.BlockSpec((r_total, tk), lambda g, k: (0, k))
            w_spec = pl.BlockSpec((lanes, n_scales * lanes), lambda g, k: (0, 0),
                                  pipeline_mode=pl.Buffered(1))
            b_spec = pl.BlockSpec((n_scales, 1, lanes), lambda g, k: (0, 0, 0),
                                  pipeline_mode=pl.Buffered(1))
            params = pltpu.CompilerParams(
                dimension_semantics=("parallel", "arbitrary"),
                vmem_limit_bytes=vmem_limit,
                allow_input_fusion=[True, False, False, False])
        else:
            e_spec = pl.BlockSpec((r_total, tk), lambda g, k: (0, k))
            w_spec = pl.BlockSpec((lanes, n_scales * lanes), lambda g, k: (0, 0))
            b_spec = pl.BlockSpec((n_scales, 1, lanes), lambda g, k: (0, 0, 0))
            params = pltpu.CompilerParams(
                dimension_semantics=("parallel", "arbitrary"),
                vmem_limit_bytes=vmem_limit)
        fn = pl.pallas_call(
            kernel,
            grid=(n_chunks, n_k),
            in_specs=[x_spec, e_spec, w_spec, b_spec],
            out_specs=pl.BlockSpec((r_total, lanes), lambda g, k: (0, g)),
            out_shape=jax.ShapeDtypeStruct((r_total, n_chunks * lanes), jnp.float32),
            scratch_shapes=[pltpu.VMEM((r_total, lanes), jnp.float32)],
            compiler_params=params,
            cost_estimate=cost,
        )
        return fn(x_packed, e_dev, w_dev, b_dev)

    try:
        out_full = jax.block_until_ready(_call(True))
    except Exception:
        # TODO(synk): pipeline_mode=pl.Buffered(1) / allow_input_fusion unsupported on
        # this jax build -- fall back to default double-buffered constant operands.
        out_full = jax.block_until_ready(_call(False))

    # Unpack: row blocks -> scales, lanes -> (batch, channel); drop padding.
    outs = []
    for i in range(n_scales):
        blk = out_full[offsets[i]:offsets[i] + targets[i], :]
        blk = blk.reshape(targets[i], b_pad, C_pad).transpose(1, 0, 2)[:B, :, :C]
        outs.append(blk)
    return outs


# ------------------------- independent numpy reference (f64) -------------------------

def _np_afb1d(v):
    n = v.shape[0]
    L = FILT_LEN
    outsize = (n + L - 1) // 2
    p = 2 * (outsize - 1) - n + L
    idx = _symmetric_pad_indices(n, p // 2, (p + 1) // 2)
    vp = v[idx]
    lo = np.zeros((outsize, v.shape[1]))
    hi = np.zeros((outsize, v.shape[1]))
    for k in range(outsize):
        seg = vp[2 * k:2 * k + L]
        lo[k] = _H0_XCORR @ seg
        hi[k] = _H1_XCORR @ seg
    return lo, hi


def _np_resize(v, target):
    cur = v.shape[0]
    if cur == target:
        return v
    if cur > target:
        out = np.zeros((target, v.shape[1]))
        for i in range(target):
            s = (i * cur) // target
            e = -((-(i + 1) * cur) // target)
            out[i] = v[s:e].mean(axis=0)
        return out
    return _resize_matrix(cur, target) @ v


def reference_forward(x, levels, weights, biases):
    B, S, C = x.shape
    targets = [S // 2 ** levels] + [S // 2 ** (levels - i) for i in range(levels)]
    per_scale = [[] for _ in range(levels + 1)]
    for b in range(B):
        v = x[b]
        highs = []
        for _ in range(levels):
            lo, hi = _np_afb1d(v)
            highs.append(hi)
            v = lo
        scales = [v] + highs
        for i, s in enumerate(scales):
            r = _np_resize(s, targets[i])
            per_scale[i].append(r @ np.asarray(weights[i], np.float64).T
                                + np.asarray(biases[i], np.float64))
    return [np.stack(ps) for ps in per_scale]


# ---------------------------------------- main ----------------------------------------

if __name__ == "__main__":
    B, S, C = 2, 16, 32
    levels = LEVELS

    key = jax.random.PRNGKey(0)
    keys = jax.random.split(key, 1 + 2 * (levels + 1))
    x = jax.random.normal(keys[0], (B, S, C), dtype=jnp.float32)
    fan = 1.0 / np.sqrt(C)
    weights = [jax.random.uniform(keys[1 + i], (C, C), jnp.float32, -fan, fan)
               for i in range(levels + 1)]
    biases = [jax.random.uniform(keys[1 + levels + 1 + i], (C,), jnp.float32, -fan, fan)
              for i in range(levels + 1)]
    # NOTE: the module's `scale_weights` parameter is never used in forward(); omitted.

    outs = wavelet_hierarchical_decompose(x, weights, biases, levels)
    outs = jax.block_until_ready(outs)

    refs = reference_forward(np.asarray(x, np.float64), levels, weights, biases)
    for o, r in zip(outs, refs):
        # bf16-operand MXU matmuls (default TPU matmul precision) vs an f64 reference
        np.testing.assert_allclose(np.asarray(o), r, rtol=1e-2, atol=1e-2)
    print("KERNEL_OK")
</pallas_src>

<mosaic_0001>
module attributes {stable_mosaic.version = 11 : i64} {
  func.func @kernel(%arg0: i32, %arg1: i32, %arg2: memref<16x128xf32, #tpu.memory_space<vmem>>, %arg3: memref<32x16xbf16, #tpu.memory_space<vmem>>, %arg4: memref<128x512xbf16, #tpu.memory_space<vmem>>, %arg5: memref<4x1x128xf32, #tpu.memory_space<vmem>>, %arg6: memref<32x128xf32, #tpu.memory_space<vmem>>, %arg7: memref<32x128xf32, #tpu.memory_space<vmem>>) attributes {dimension_semantics = [#tpu.dimension_semantics<parallel>, #tpu.dimension_semantics<arbitrary>], iteration_bounds = array<i64: 1, 1>, scalar_prefetch = 0 : i64, scratch_operands = 1 : i64, tpu.core_type = #tpu.core_type<tc>, window_params = [{transform_indices = @transform_0, window_bounds = array<i64: 16, 128>}, {pipeline_mode = #tpu.pipeline_mode<synchronous>, transform_indices = @transform_1, window_bounds = array<i64: 32, 16>}, {pipeline_mode = #tpu.pipeline_mode<synchronous>, transform_indices = @transform_2, window_bounds = array<i64: 128, 512>}, {pipeline_mode = #tpu.pipeline_mode<synchronous>, transform_indices = @transform_3, window_bounds = array<i64: 4, 1, 128>}, {transform_indices = @transform_4, window_bounds = array<i64: 32, 128>}]} {
    %c0_i32 = arith.constant 0 : i32
    %0 = arith.cmpi eq, %arg1, %c0_i32 : i32
    %1 = arith.extui %0 : i1 to i32
    %c0_i32_0 = arith.constant 0 : i32
    %2 = arith.cmpi ne, %1, %c0_i32_0 : i32
    scf.if %2 {
      %cst_10 = arith.constant 0.000000e+00 : f32
      %13 = vector.broadcast %cst_10 : f32 to vector<32x128xf32>
      %c0_11 = arith.constant 0 : index
      %c0_12 = arith.constant 0 : index
      %14 = vector.load %arg7[%c0_11, %c0_12] : memref<32x128xf32, #tpu.memory_space<vmem>>, vector<32x128xf32>
      tpu.vector_store %arg7[%c0_11, %c0_12], %13 {strides = array<i32>} : memref<32x128xf32, #tpu.memory_space<vmem>>, vector<32x128xf32>,
    } else {
    }
    %c0 = arith.constant 0 : index
    %c0_1 = arith.constant 0 : index
    %3 = vector.load %arg7[%c0, %c0_1] : memref<32x128xf32, #tpu.memory_space<vmem>>, vector<32x128xf32>
    %c0_2 = arith.constant 0 : index
    %c0_3 = arith.constant 0 : index
    %4 = vector.load %arg3[%c0_2, %c0_3] : memref<32x16xbf16, #tpu.memory_space<vmem>>, vector<32x16xbf16>
    %c0_4 = arith.constant 0 : index
    %c0_5 = arith.constant 0 : index
    %5 = vector.load %arg2[%c0_4, %c0_5] : memref<16x128xf32, #tpu.memory_space<vmem>>, vector<16x128xf32>
    %6 = arith.truncf %5 : vector<16x128xf32> to vector<16x128xbf16>
    %cst = arith.constant dense<0.000000e+00> : vector<32x128xf32>
    %7 = tpu.matmul %4, %6, %cst {dimension_numbers = #tpu.dot_dimension_numbers<[1], [0], [0], [1], [0, 0, 1, 1], [], []>} : vector<32x16xbf16>, vector<16x128xbf16>, vector<32x128xf32> -> vector<32x128xf32>
    %8 = arith.addf %3, %7 : vector<32x128xf32>
    %c0_6 = arith.constant 0 : index
    %c0_7 = arith.constant 0 : index
    %9 = vector.load %arg7[%c0_6, %c0_7] : memref<32x128xf32, #tpu.memory_space<vmem>>, vector<32x128xf32>
    tpu.vector_store %arg7[%c0_6, %c0_7], %8 {strides = array<i32>} : memref<32x128xf32, #tpu.memory_space<vmem>>, vector<32x128xf32>,
    %c0_i32_8 = arith.constant 0 : i32
    %10 = arith.cmpi eq, %arg1, %c0_i32_8 : i32
    %11 = arith.extui %10 : i1 to i32
    %c0_i32_9 = arith.constant 0 : i32
    %12 = arith.cmpi ne, %11, %c0_i32_9 : i32
    scf.if %12 {
      %c0_10 = arith.constant 0 : index
      %c0_11 = arith.constant 0 : index
      %13 = vector.load %arg7[%c0_10, %c0_11] : memref<32x128xf32, #tpu.memory_space<vmem>>, vector<32x128xf32>
      %14 = arith.truncf %13 : vector<32x128xf32> to vector<32x128xbf16>
      %c0_12 = arith.constant 0 : index
      %c0_13 = arith.constant 0 : index
      %15 = vector.load %arg4[%c0_12, %c0_13] : memref<128x512xbf16, #tpu.memory_space<vmem>>, vector<128x512xbf16>
      %cst_14 = arith.constant dense<0.000000e+00> : vector<32x512xf32>
      %16 = tpu.matmul %14, %15, %cst_14 {dimension_numbers = #tpu.dot_dimension_numbers<[1], [0], [0], [1], [0, 0, 1, 1], [], []>} : vector<32x128xbf16>, vector<128x512xbf16>, vector<32x512xf32> -> vector<32x512xf32>
      %17 = vector.extract_strided_slice %16 {offsets = [0, 0], sizes = [8, 128], strides = [1, 1]} : vector<32x512xf32> to vector<8x128xf32>
      %c0_15 = arith.constant 0 : index
      %c0_16 = arith.constant 0 : index
      %c0_17 = arith.constant 0 : index
      %18 = vector.load %arg5[%c0_15, %c0_16, %c0_17] : memref<4x1x128xf32, #tpu.memory_space<vmem>>, vector<1x1x128xf32>
      %19 = vector.shape_cast %18 : vector<1x1x128xf32> to vector<1x128xf32>
      %20 = vector.broadcast %19 : vector<1x128xf32> to vector<8x128xf32>
      %21 = arith.addf %17, %20 : vector<8x128xf32>
      %c0_18 = arith.constant 0 : index
      %c0_19 = arith.constant 0 : index
      %22 = vector.load %arg6[%c0_18, %c0_19] : memref<32x128xf32, #tpu.memory_space<vmem>>, vector<8x128xf32>
      tpu.vector_store %arg6[%c0_18, %c0_19], %21 {strides = array<i32>} : memref<32x128xf32, #tpu.memory_space<vmem>>, vector<8x128xf32>,
      %23 = vector.extract_strided_slice %16 {offsets = [8, 128], sizes = [8, 128], strides = [1, 1]} : vector<32x512xf32> to vector<8x128xf32>
      %c1 = arith.constant 1 : index
      %c0_20 = arith.constant 0 : index
      %c0_21 = arith.constant 0 : index
      %24 = vector.load %arg5[%c1, %c0_20, %c0_21] : memref<4x1x128xf32, #tpu.memory_space<vmem>>, vector<1x1x128xf32>
      %25 = vector.shape_cast %24 : vector<1x1x128xf32> to vector<1x128xf32>
      %26 = vector.broadcast %25 : vector<1x128xf32> to vector<8x128xf32>
      %27 = arith.addf %23, %26 : vector<8x128xf32>
      %c8 = arith.constant 8 : index
      %c0_22 = arith.constant 0 : index
      %28 = vector.load %arg6[%c8, %c0_22] : memref<32x128xf32, #tpu.memory_space<vmem>>, vector<8x128xf32>
      tpu.vector_store %arg6[%c8, %c0_22], %27 {strides = array<i32>} : memref<32x128xf32, #tpu.memory_space<vmem>>, vector<8x128xf32>,
      %29 = vector.extract_strided_slice %16 {offsets = [16, 256], sizes = [8, 128], strides = [1, 1]} : vector<32x512xf32> to vector<8x128xf32>
      %c2 = arith.constant 2 : index
      %c0_23 = arith.constant 0 : index
      %c0_24 = arith.constant 0 : index
      %30 = vector.load %arg5[%c2, %c0_23, %c0_24] : memref<4x1x128xf32, #tpu.memory_space<vmem>>, vector<1x1x128xf32>
      %31 = vector.shape_cast %30 : vector<1x1x128xf32> to vector<1x128xf32>
      %32 = vector.broadcast %31 : vector<1x128xf32> to vector<8x128xf32>
      %33 = arith.addf %29, %32 : vector<8x128xf32>
      %c16 = arith.constant 16 : index
      %c0_25 = arith.constant 0 : index
      %34 = vector.load %arg6[%c16, %c0_25] : memref<32x128xf32, #tpu.memory_space<vmem>>, vector<8x128xf32>
      tpu.vector_store %arg6[%c16, %c0_25], %33 {strides = array<i32>} : memref<32x128xf32, #tpu.memory_space<vmem>>, vector<8x128xf32>,
      %35 = vector.extract_strided_slice %16 {offsets = [24, 384], sizes = [8, 128], strides = [1, 1]} : vector<32x512xf32> to vector<8x128xf32>
      %c3 = arith.constant 3 : index
      %c0_26 = arith.constant 0 : index
      %c0_27 = arith.constant 0 : index
      %36 = vector.load %arg5[%c3, %c0_26, %c0_27] : memref<4x1x128xf32, #tpu.memory_space<vmem>>, vector<1x1x128xf32>
      %37 = vector.shape_cast %36 : vector<1x1x128xf32> to vector<1x128xf32>
      %38 = vector.broadcast %37 : vector<1x128xf32> to vector<8x128xf32>
      %39 = arith.addf %35, %38 : vector<8x128xf32>
      %c24 = arith.constant 24 : index
      %c0_28 = arith.constant 0 : index
      %40 = vector.load %arg6[%c24, %c0_28] : memref<32x128xf32, #tpu.memory_space<vmem>>, vector<8x128xf32>
      tpu.vector_store %arg6[%c24, %c0_28], %39 {strides = array<i32>} : memref<32x128xf32, #tpu.memory_space<vmem>>, vector<8x128xf32>,
    } else {
    }
    return
  }
  func.func @transform_0(%arg0: i32, %arg1: i32) -> (i32, i32) {
    %c0_i32 = arith.constant 0 : i32
    return %arg1, %arg0 : i32, i32
  }
  func.func @transform_1(%arg0: i32, %arg1: i32) -> (i32, i32) {
    %c0_i32 = arith.constant 0 : i32
    %c0_i32_0 = arith.constant 0 : i32
    return %c0_i32, %arg1 : i32, i32
  }
  func.func @transform_2(%arg0: i32, %arg1: i32) -> (i32, i32) {
    %c0_i32 = arith.constant 0 : i32
    %c0_i32_0 = arith.constant 0 : i32
    %c0_i32_1 = arith.constant 0 : i32
    return %c0_i32, %c0_i32_0 : i32, i32
  }
  func.func @transform_3(%arg0: i32, %arg1: i32) -> (i32, i32, i32) {
    %c0_i32 = arith.constant 0 : i32
    %c0_i32_0 = arith.constant 0 : i32
    %c0_i32_1 = arith.constant 0 : i32
    %c0_i32_2 = arith.constant 0 : i32
    return %c0_i32, %c0_i32_0, %c0_i32_1 : i32, i32, i32
  }
  func.func @transform_4(%arg0: i32, %arg1: i32) -> (i32, i32) {
    %c0_i32 = arith.constant 0 : i32
    %c0_i32_0 = arith.constant 0 : i32
    return %c0_i32, %arg0 : i32, i32
  }
}

module attributes {stable_mosaic.version = 11 : i64} {
  func.func @kernel(%arg0: i32, %arg1: i32, %arg2: memref<16x128xf32, #tpu.memory_space<vmem>>, %arg3: memref<32x16xbf16, #tpu.memory_space<vmem>>, %arg4: memref<128x512xbf16, #tpu.memory_space<vmem>>, %arg5: memref<4x1x128xf32, #tpu.memory_space<vmem>>, %arg6: memref<32x128xf32, #tpu.memory_space<vmem>>, %arg7: memref<32x128xf32, #tpu.memory_space<vmem>>) attributes {dimension_semantics = [#tpu.dimension_semantics<parallel>, #tpu.dimension_semantics<arbitrary>], iteration_bounds = array<i64: 1, 1>, scalar_prefetch = 0 : i64, scratch_operands = 1 : i64, tpu.core_type = #tpu.core_type<tc>, window_params = [{transform_indices = @transform_0, window_bounds = array<i64: 16, 128>}, {transform_indices = @transform_1, window_bounds = array<i64: 32, 16>}, {pipeline_mode = #tpu.pipeline_mode<synchronous>, transform_indices = @transform_2, window_bounds = array<i64: 128, 512>}, {pipeline_mode = #tpu.pipeline_mode<synchronous>, transform_indices = @transform_3, window_bounds = array<i64: 4, 1, 128>}, {transform_indices = @transform_4, window_bounds = array<i64: 32, 128>}]} {
    %c0_i32 = arith.constant 0 : i32
    %0 = arith.cmpi eq, %arg1, %c0_i32 : i32
    %1 = arith.extui %0 : i1 to i32
    %c0_i32_0 = arith.constant 0 : i32
    %2 = arith.cmpi ne, %1, %c0_i32_0 : i32
    scf.if %2 {
      %cst_10 = arith.constant 0.000000e+00 : f32
      %13 = vector.broadcast %cst_10 : f32 to vector<32x128xf32>
      %c0_11 = arith.constant 0 : index
      %c0_12 = arith.constant 0 : index
      %14 = vector.load %arg7[%c0_11, %c0_12] : memref<32x128xf32, #tpu.memory_space<vmem>>, vector<32x128xf32>
      tpu.vector_store %arg7[%c0_11, %c0_12], %13 {strides = array<i32>} : memref<32x128xf32, #tpu.memory_space<vmem>>, vector<32x128xf32>,
    } else {
    }
    %c0 = arith.constant 0 : index
    %c0_1 = arith.constant 0 : index
    %3 = vector.load %arg7[%c0, %c0_1] : memref<32x128xf32, #tpu.memory_space<vmem>>, vector<32x128xf32>
    %c0_2 = arith.constant 0 : index
    %c0_3 = arith.constant 0 : index
    %4 = vector.load %arg3[%c0_2, %c0_3] : memref<32x16xbf16, #tpu.memory_space<vmem>>, vector<32x16xbf16>
    %c0_4 = arith.constant 0 : index
    %c0_5 = arith.constant 0 : index
    %5 = vector.load %arg2[%c0_4, %c0_5] : memref<16x128xf32, #tpu.memory_space<vmem>>, vector<16x128xf32>
    %6 = arith.truncf %5 : vector<16x128xf32> to vector<16x128xbf16>
    %cst = arith.constant dense<0.000000e+00> : vector<32x128xf32>
    %7 = tpu.matmul %4, %6, %cst {dimension_numbers = #tpu.dot_dimension_numbers<[1], [0], [0], [1], [0, 0, 1, 1], [], []>} : vector<32x16xbf16>, vector<16x128xbf16>, vector<32x128xf32> -> vector<32x128xf32>
    %8 = arith.addf %3, %7 : vector<32x128xf32>
    %c0_6 = arith.constant 0 : index
    %c0_7 = arith.constant 0 : index
    %9 = vector.load %arg7[%c0_6, %c0_7] : memref<32x128xf32, #tpu.memory_space<vmem>>, vector<32x128xf32>
    tpu.vector_store %arg7[%c0_6, %c0_7], %8 {strides = array<i32>} : memref<32x128xf32, #tpu.memory_space<vmem>>, vector<32x128xf32>,
    %c0_i32_8 = arith.constant 0 : i32
    %10 = arith.cmpi eq, %arg1, %c0_i32_8 : i32
    %11 = arith.extui %10 : i1 to i32
    %c0_i32_9 = arith.constant 0 : i32
    %12 = arith.cmpi ne, %11, %c0_i32_9 : i32
    scf.if %12 {
      %c0_10 = arith.constant 0 : index
      %c0_11 = arith.constant 0 : index
      %13 = vector.load %arg7[%c0_10, %c0_11] : memref<32x128xf32, #tpu.memory_space<vmem>>, vector<32x128xf32>
      %14 = arith.truncf %13 : vector<32x128xf32> to vector<32x128xbf16>
      %c0_12 = arith.constant 0 : index
      %c0_13 = arith.constant 0 : index
      %15 = vector.load %arg4[%c0_12, %c0_13] : memref<128x512xbf16, #tpu.memory_space<vmem>>, vector<128x512xbf16>
      %cst_14 = arith.constant dense<0.000000e+00> : vector<32x512xf32>
      %16 = tpu.matmul %14, %15, %cst_14 {dimension_numbers = #tpu.dot_dimension_numbers<[1], [0], [0], [1], [0, 0, 1, 1], [], []>} : vector<32x128xbf16>, vector<128x512xbf16>, vector<32x512xf32> -> vector<32x512xf32>
      %17 = vector.extract_strided_slice %16 {offsets = [0, 0], sizes = [8, 128], strides = [1, 1]} : vector<32x512xf32> to vector<8x128xf32>
      %c0_15 = arith.constant 0 : index
      %c0_16 = arith.constant 0 : index
      %c0_17 = arith.constant 0 : index
      %18 = vector.load %arg5[%c0_15, %c0_16, %c0_17] : memref<4x1x128xf32, #tpu.memory_space<vmem>>, vector<1x1x128xf32>
      %19 = vector.shape_cast %18 : vector<1x1x128xf32> to vector<1x128xf32>
      %20 = vector.broadcast %19 : vector<1x128xf32> to vector<8x128xf32>
      %21 = arith.addf %17, %20 : vector<8x128xf32>
      %c0_18 = arith.constant 0 : index
      %c0_19 = arith.constant 0 : index
      %22 = vector.load %arg6[%c0_18, %c0_19] : memref<32x128xf32, #tpu.memory_space<vmem>>, vector<8x128xf32>
      tpu.vector_store %arg6[%c0_18, %c0_19], %21 {strides = array<i32>} : memref<32x128xf32, #tpu.memory_space<vmem>>, vector<8x128xf32>,
      %23 = vector.extract_strided_slice %16 {offsets = [8, 128], sizes = [8, 128], strides = [1, 1]} : vector<32x512xf32> to vector<8x128xf32>
      %c1 = arith.constant 1 : index
      %c0_20 = arith.constant 0 : index
      %c0_21 = arith.constant 0 : index
      %24 = vector.load %arg5[%c1, %c0_20, %c0_21] : memref<4x1x128xf32, #tpu.memory_space<vmem>>, vector<1x1x128xf32>
      %25 = vector.shape_cast %24 : vector<1x1x128xf32> to vector<1x128xf32>
      %26 = vector.broadcast %25 : vector<1x128xf32> to vector<8x128xf32>
      %27 = arith.addf %23, %26 : vector<8x128xf32>
      %c8 = arith.constant 8 : index
      %c0_22 = arith.constant 0 : index
      %28 = vector.load %arg6[%c8, %c0_22] : memref<32x128xf32, #tpu.memory_space<vmem>>, vector<8x128xf32>
      tpu.vector_store %arg6[%c8, %c0_22], %27 {strides = array<i32>} : memref<32x128xf32, #tpu.memory_space<vmem>>, vector<8x128xf32>,
      %29 = vector.extract_strided_slice %16 {offsets = [16, 256], sizes = [8, 128], strides = [1, 1]} : vector<32x512xf32> to vector<8x128xf32>
      %c2 = arith.constant 2 : index
      %c0_23 = arith.constant 0 : index
      %c0_24 = arith.constant 0 : index
      %30 = vector.load %arg5[%c2, %c0_23, %c0_24] : memref<4x1x128xf32, #tpu.memory_space<vmem>>, vector<1x1x128xf32>
      %31 = vector.shape_cast %30 : vector<1x1x128xf32> to vector<1x128xf32>
      %32 = vector.broadcast %31 : vector<1x128xf32> to vector<8x128xf32>
      %33 = arith.addf %29, %32 : vector<8x128xf32>
      %c16 = arith.constant 16 : index
      %c0_25 = arith.constant 0 : index
      %34 = vector.load %arg6[%c16, %c0_25] : memref<32x128xf32, #tpu.memory_space<vmem>>, vector<8x128xf32>
      tpu.vector_store %arg6[%c16, %c0_25], %33 {strides = array<i32>} : memref<32x128xf32, #tpu.memory_space<vmem>>, vector<8x128xf32>,
      %35 = vector.extract_strided_slice %16 {offsets = [24, 384], sizes = [8, 128], strides = [1, 1]} : vector<32x512xf32> to vector<8x128xf32>
      %c3 = arith.constant 3 : index
      %c0_26 = arith.constant 0 : index
      %c0_27 = arith.constant 0 : index
      %36 = vector.load %arg5[%c3, %c0_26, %c0_27] : memref<4x1x128xf32, #tpu.memory_space<vmem>>, vector<1x1x128xf32>
      %37 = vector.shape_cast %36 : vector<1x1x128xf32> to vector<1x128xf32>
      %38 = vector.broadcast %37 : vector<1x128xf32> to vector<8x128xf32>
      %39 = arith.addf %35, %38 : vector<8x128xf32>
      %c24 = arith.constant 24 : index
      %c0_28 = arith.constant 0 : index
      %40 = vector.load %arg6[%c24, %c0_28] : memref<32x128xf32, #tpu.memory_space<vmem>>, vector<8x128xf32>
      tpu.vector_store %arg6[%c24, %c0_28], %39 {strides = array<i32>} : memref<32x128xf32, #tpu.memory_space<vmem>>, vector<8x128xf32>,
    } else {
    }
    return
  }
  func.func @transform_0(%arg0: i32, %arg1: i32) -> (i32, i32) {
    %c0_i32 = arith.constant 0 : i32
    return %arg1, %arg0 : i32, i32
  }
  func.func @transform_1(%arg0: i32, %arg1: i32) -> (i32, i32) {
    %c0_i32 = arith.constant 0 : i32
    %c0_i32_0 = arith.constant 0 : i32
    return %c0_i32, %arg1 : i32, i32
  }
  func.func @transform_2(%arg0: i32, %arg1: i32) -> (i32, i32) {
    %c0_i32 = arith.constant 0 : i32
    %c0_i32_0 = arith.constant 0 : i32
    %c0_i32_1 = arith.constant 0 : i32
    return %c0_i32, %c0_i32_0 : i32, i32
  }
  func.func @transform_3(%arg0: i32, %arg1: i32) -> (i32, i32, i32) {
    %c0_i32 = arith.constant 0 : i32
    %c0_i32_0 = arith.constant 0 : i32
    %c0_i32_1 = arith.constant 0 : i32
    %c0_i32_2 = arith.constant 0 : i32
    return %c0_i32, %c0_i32_0, %c0_i32_1 : i32, i32, i32
  }
  func.func @transform_4(%arg0: i32, %arg1: i32) -> (i32, i32) {
    %c0_i32 = arith.constant 0 : i32
    %c0_i32_0 = arith.constant 0 : i32
    return %c0_i32, %arg0 : i32, i32
  }
}

</mosaic_0001>

<bundles_post_ra>
// kernel: tpu_custom_call.1
= control target key start
LH: loop header
LB: loop body
LE: loop exit
PB: predicated region body
PF: predicated region fallthrough
CT: control target
= control target key end

     0   :  { %9 = vsyncpa [#allocation4], 0  ;;  %s692_s0 = inlined_call_operand.vmem [shape: f32[16,128], index: 0, kind: input, shape index: {}]   ;;  %s693_s1 = inlined_call_operand.vmem [shape: bf16[32,16], index: 1, kind: input, shape index: {}]   ;;  %s694_s2 = inlined_call_operand.hbm [shape: bf16[128,512], index: 2, kind: input, shape index: {}]   ;;  %s695_s3 = inlined_call_operand.vmem [shape: f32[4,1,128], index: 3, kind: input, shape index: {}]   ;;  %s696_s4 = inlined_call_operand.hbm [shape: f32[32,128], index: 4, kind: output, shape index: {}]  }
   0x1   :  { %10 = vsyncpa [#allocation5], 0  ;;  %s630_s15 = smov [#allocation3]  }
   0x2   :  { %s20_s16 = sshll.u32 %s630_s15, 4  ;;  %s21_s16 = int_to_ptr.vmem [resolvable:$true] %s20_s16 }
   0x3   :  { %s594_s17 = scalar_lea.vmem %s21_s16, 4096  ;;  %p599_p1 = scmp.lt.s32.totalorder %s21_s16, %s21_s16 }
   0x4   :  { %p595_p0 = scmp.ne.s32.totalorder %s21_s16, %s594_s17  ;;  %p600_p2 = scmp.lt.s32.totalorder %s594_s17, %s594_s17 }
   0x6   :  { %p601_p3 = por %p600_p2, %p599_p1 }
   0x8   :  { %p602_p4 = pnand %p601_p3, %p595_p0 }
   0xa   :  { %605 = shalt.err (!%p602_p4)
}
   0xb   :  { %s631_s18 = smov 256   ;;  %s632_s19 = smov 16  }
   0xc   :  { %26 = dma.hbm_to_vmem [thread:$0]  %s694_s2, 4096, %s21_s16, [#allocation4], %s631_s18, %s631_s18, %s632_s19  }
   0xd   :  { %626 = dma.done.wait [#allocation4], 4096  }
   0xe   :  { %627 = vsyncadd [#allocation4], 4294963200  ;;  %v49_v0 = vld [vmem:[%s692_s0] sm:$0xff]  ;;  %v50_v1 = vld [vmem:[%s692_s0 + $0x8] sm:$0xff]  ;;  %vm62_vm0 = vcmask 130048   ;;  %v633_v37 = vmov 0  }
   0xf   :  { %v51_v2 = vpack.c.bf16 %v50_v1, %v49_v0  ;;  %v536_v3 = vld [vmem:[%s693_s1] sm:$0xff]   ;;  %v537_v4 = vld [vmem:[%s693_s1 + $0x8] sm:$0xff]   ;;  %359 = vmatprep.mubr.bf16.mxu1 %v633_v37  ;;  %s634_s7 = smov [#allocation6]  }
  0x10   :  { %525 = vmatprep.mubr.msk.bf16.mxu0 %vm62_vm0, %v536_v3  ;;  %v538_v5 = vld [vmem:[#allocation3 + $0xe4] ss:$16 sps:$4 sm:$0xff]   ;;  %v540_v6 = vld [vmem:[#allocation3 + $0xe8] ss:$16 sps:$4 sm:$0xff]   ;;  %v542_v7 = vld [vmem:[#allocation3 + $0xec] ss:$16 sps:$4 sm:$0xff]  }
  0x11   :  { %523 = vmatprep.subr.bf16.mxu0 %v51_v2  ;;  %327 = vmatprep.subr.bf16.mxu1 %v538_v5  ;;  %v543_v8 = vld [vmem:[#allocation3 + $0xe0] ss:$16 sps:$4 sm:$0xff]   ;;  %v544_v9 = vld [vmem:[#allocation3 + $0xc4] ss:$16 sps:$4 sm:$0xff]   ;;  %v546_v10 = vld [vmem:[#allocation3 + $0xc8] ss:$16 sps:$4 sm:$0xff]  }
  0x12   :  { %524 = vmatpush3.bf16.msra.mxu0 %v51_v2  ;;  %328 = vmatpush1.bf16.msra.mxu1 %v543_v8  ;;  %v548_v11 = vld [vmem:[#allocation3 + $0xcc] ss:$16 sps:$4 sm:$0xff]   ;;  %v549_v12 = vld [vmem:[#allocation3 + $0xc0] ss:$16 sps:$4 sm:$0xff]   ;;  %v550_v13 = vld [vmem:[#allocation3 + $0xa4] ss:$16 sps:$4 sm:$0xff]  }
  0x13   :  { %374 = vmatprep.subr.bf16.mxu0 %v542_v7  ;;  %329 = vmatprep.subr.bf16.mxu1 %v544_v9  ;;  %v554_v14 = vld [vmem:[#allocation3 + $0xac] ss:$16 sps:$4 sm:$0xff]   ;;  %v555_v15 = vld [vmem:[#allocation3 + $0xa0] ss:$16 sps:$4 sm:$0xff]   ;;  %v552_v16 = vld [vmem:[#allocation3 + $0xa8] ss:$16 sps:$4 sm:$0xff]  }
  0x14   :  { %v556_v17 = vld [vmem:[#allocation3 + $0x84] ss:$16 sps:$4 sm:$0xff]   ;;  %v560_v18 = vld [vmem:[#allocation3 + $0x8c] ss:$16 sps:$4 sm:$0xff]   ;;  %v558_v19 = vld [vmem:[#allocation3 + $0x88] ss:$16 sps:$4 sm:$0xff]  }
  0x15   :  { %526 = vmatmul.mubr.msk.bf16.vlgmr.msra.gmra.mxu0 %vm62_vm0, %v537_v4  ;;  %v561_v20 = vld [vmem:[#allocation3 + $0x80] ss:$16 sps:$4 sm:$0xff]   ;;  %v562_v21 = vld [vmem:[#allocation3 + $0x64] ss:$16 sps:$4 sm:$0xff]   ;;  %v566_v22 = vld [vmem:[#allocation3 + $0x6c] ss:$16 sps:$4 sm:$0xff]  }
  0x16   :  { %375 = vmatpush1.bf16.msra.mxu0 %v540_v6  ;;  %330 = vmatpush1.bf16.msra.mxu1 %v549_v12  ;;  %v564_v23 = vld [vmem:[#allocation3 + $0x68] ss:$16 sps:$4 sm:$0xff]   ;;  %v567_v24 = vld [vmem:[#allocation3 + $0x60] ss:$16 sps:$4 sm:$0xff]   ;;  %v568_v25 = vld [vmem:[#allocation3 + $0x44] ss:$16 sps:$4 sm:$0xff]  }
  0x17   :  { %376 = vmatprep.subr.bf16.mxu0 %v548_v11  ;;  %331 = vmatprep.subr.bf16.mxu1 %v550_v13  ;;  %v572_v26 = vld [vmem:[#allocation3 + $0x4c] ss:$16 sps:$4 sm:$0xff]   ;;  %v573_v27 = vld [vmem:[#allocation3 + $0x40] ss:$16 sps:$4 sm:$0xff]   ;;  %v570_v28 = vld [vmem:[#allocation3 + $0x48] ss:$16 sps:$4 sm:$0xff]  }
  0x18   :  { %v574_v29 = vld [vmem:[#allocation3 + $0x24] ss:$16 sps:$4 sm:$0xff]   ;;  %v578_v30 = vld [vmem:[#allocation3 + $0x2c] ss:$16 sps:$4 sm:$0xff]   ;;  %v576_v31 = vld [vmem:[#allocation3 + $0x28] ss:$16 sps:$4 sm:$0xff]   ;;  %406 = vmatprep.mubr.bf16.mxu0 %v633_v37 }
  0x19   :  { %v579_v32 = vld [vmem:[#allocation3 + $0x20] ss:$16 sps:$4 sm:$0xff]   ;;  %v580_v33 = vld [vmem:[#allocation3 + $0x4] ss:$16 sps:$4 sm:$0xff]   ;;  %v584_v34 = vld [vmem:[#allocation3 + $0xc] ss:$16 sps:$4 sm:$0xff]  }
  0x1a   :  { %377 = vmatpush1.bf16.msra.mxu0 %v546_v10  ;;  %332 = vmatpush1.bf16.msra.mxu1 %v555_v15  ;;  %v582_v35 = vld [vmem:[#allocation3 + $0x8] ss:$16 sps:$4 sm:$0xff]   ;;  %v585_v36 = vld [vmem:[#allocation3] ss:$16 sps:$4 sm:$0xff]   ;;  %s465_s8 = sshll.u32 %s634_s7, 4  ;;  %s466_s8 = int_to_ptr.vmem [resolvable:$true] %s465_s8 }
  0x1b   :  { %378 = vmatprep.subr.bf16.mxu0 %v554_v14  ;;  %333 = vmatprep.subr.bf16.mxu1 %v556_v17  ;;  %v513_v44 = vld [vmem:[%s695_s3] ss:$0 sm:$0xff]  ;;  %v515_v52 = vld [vmem:[%s695_s3 + $0x1] ss:$0 sm:$0xff]  ;;  %v517_v55 = vld [vmem:[%s695_s3 + $0x2] ss:$0 sm:$0xff]  ;;  %p611_p6 = scmp.lt.s32.totalorder %s466_s8, %s466_s8 }
  0x1c   :  { %v519_v0 = vld [vmem:[%s695_s3 + $0x3] ss:$0 sm:$0xff]  ;;  %s606_s11 = scalar_lea.vmem %s466_s8, 512 }
  0x1d   :  { %p607_p5 = scmp.ne.s32.totalorder %s466_s8, %s606_s11  ;;  %p612_p7 = scmp.lt.s32.totalorder %s606_s11, %s606_s11 }
  0x1e   :  { %379 = vmatpush1.bf16.msra.mxu0 %v552_v16  ;;  %334 = vmatpush1.bf16.msra.mxu1 %v561_v20 }
  0x1f   :  { %380 = vmatprep.subr.bf16.mxu0 %v560_v18  ;;  %335 = vmatprep.subr.bf16.mxu1 %v562_v21  ;;  %p613_p8 = por %p612_p7, %p611_p6 }
  0x21   :  { %p614_p9 = pnand %p613_p8, %p607_p5 }
  0x22   :  { %381 = vmatpush1.bf16.msra.mxu0 %v558_v19  ;;  %336 = vmatpush1.bf16.msra.mxu1 %v567_v24 }
  0x23   :  { %382 = vmatprep.subr.bf16.mxu0 %v566_v22  ;;  %337 = vmatprep.subr.bf16.mxu1 %v568_v25 }
  0x26   :  { %383 = vmatpush1.bf16.msra.mxu0 %v564_v23  ;;  %338 = vmatpush1.bf16.msra.mxu1 %v573_v27 }
  0x27   :  { %384 = vmatprep.subr.bf16.mxu0 %v572_v26  ;;  %339 = vmatprep.subr.bf16.mxu1 %v574_v29 }
  0x2a   :  { %385 = vmatpush1.bf16.msra.mxu0 %v570_v28  ;;  %340 = vmatpush1.bf16.msra.mxu1 %v579_v32 }
  0x2b   :  { %386 = vmatprep.subr.bf16.mxu0 %v578_v30  ;;  %341 = vmatprep.subr.bf16.mxu1 %v580_v33 }
  0x2e   :  { %387 = vmatpush1.bf16.msra.mxu0 %v576_v31  ;;  %342 = vmatpush1.bf16.msra.mxu1 %v585_v36 }
  0x2f   :  { %388 = vmatprep.subr.bf16.mxu0 %v584_v34 }
  0x32   :  { %389 = vmatpush1.bf16.msra.mxu0 %v582_v35 }
  0xd5   :  { %v527_v38 = vpop.f32.mrf.mxu0 }
  0xd7   :  { %v103_v39 = vpop.f32.mrf.mxu0 }
  0xd9   :  { %v528_v40 = vpop.f32.mrf.mxu0 }
  0xda   :  { %v134_v43 = vpack.c.bf16 %v528_v40, %v527_v38 }
  0xdb   :  { %v106_v41 = vpop.f32.mrf.mxu0 }
  0xdc   :  { %v133_v42 = vpack.c.bf16 %v106_v41, %v103_v39 }
  0xde   :  { %360 = vmatmul.mubr.bf16.vlgmr.msra.gmra.mxu1 %v133_v42  ;;  %407 = vmatmul.mubr.bf16.vlgmr.msra.gmra.mxu0 %v133_v42 }
  0xdf   :  { %367 = vmatprep.mubr.bf16.mxu1 %v633_v37  ;;  %412 = vmatprep.mubr.bf16.mxu0 %v633_v37 }
  0xe6   :  { %368 = vmatmul.mubr.bf16.gmra.mxu1 %v134_v43  ;;  %413 = vmatmul.mubr.bf16.gmra.mxu0 %v134_v43 }
 0x19e   :  { %v361_v45 = vpop.f32.mrf.mxu1  ;;  %v408_v46 = vpop.f32.mrf.mxu0 }
 0x19f   :  { %v428_v47 = vadd.f32 %v513_v44, %v361_v45 }
 0x1a0   :  { %v363_v48 = vpop.f32.mrf.mxu1  ;;  %v409_v49 = vpop.f32.mrf.mxu0 }
 0x1a1   :  { %429 = vst [vmem:[#allocation6] sm:$0xff] %v428_v47 }
 0x1a2   :  { %v364_v50 = vpop.f32.mrf.mxu1  ;;  %v410_v51 = vpop.f32.mrf.mxu0 }
 0x1a4   :  { %v365_v53 = vpop.f32.mrf.mxu1  ;;  %v411_v54 = vpop.f32.mrf.mxu0 }
 0x1a5   :  { %v438_v56 = vadd.f32 %v515_v52, %v365_v53 }
 0x1a6   :  { %v369_v57 = vpop.f32.mrf.mxu1  ;;  %v414_v58 = vpop.f32.mrf.mxu0 }
 0x1a7   :  { %439 = vst [vmem:[#allocation6 + $0x8] sm:$0xff] %v438_v56  ;;  %v448_v59 = vadd.f32 %v517_v55, %v414_v58 }
 0x1a8   :  { %v370_v60 = vpop.f32.mrf.mxu1  ;;  %v416_v61 = vpop.f32.mrf.mxu0 }
 0x1a9   :  { %449 = vst [vmem:[#allocation6 + $0x10] sm:$0xff] %v448_v59 }
 0x1aa   :  { %v371_v62 = vpop.f32.mrf.mxu1  ;;  %v417_v63 = vpop.f32.mrf.mxu0 }
 0x1ac   :  { %v372_v1 = vpop.f32.mrf.mxu1  ;;  %v418_v2 = vpop.f32.mrf.mxu0 }
 0x1ad   :  { %v458_v3 = vadd.f32 %v519_v0, %v418_v2 }
 0x1af   :  { %459 = vst [vmem:[#allocation6 + $0x18] sm:$0xff] %v458_v3 }
 0x1b0   :  { %617 = shalt.err (!%p614_p9)
}
 0x1b1   :  { %s635_s12 = smov 128   ;;  %s636_s13 = smov 8  }
 0x1b2   :  { %471 = dma.vmem_to_hbm [thread:$0]  %s466_s8, 512, %s696_s4, [#allocation5], %s635_s12, %s635_s12, %s636_s13  }
 0x1b3   :  { %628 = dma.done.wait [#allocation5], 512  }
 0x1b4   :  { %629 = vsyncadd [#allocation5], 4294966784 }
 0x1b5   :  { %475 = vsyncpa [#allocation4], 1 }
 0x1b6   :  { %476 = vsyncpa [#allocation5], 1 }

// kernel: tpu_custom_call.1
= control target key start
LH: loop header
LB: loop body
LE: loop exit
PB: predicated region body
PF: predicated region fallthrough
CT: control target
= control target key end

     0   :  { %9 = vsyncpa [#allocation4], 0  ;;  %s692_s0 = inlined_call_operand.vmem [shape: f32[16,128], index: 0, kind: input, shape index: {}]   ;;  %s693_s1 = inlined_call_operand.vmem [shape: bf16[32,16], index: 1, kind: input, shape index: {}]   ;;  %s694_s2 = inlined_call_operand.hbm [shape: bf16[128,512], index: 2, kind: input, shape index: {}]   ;;  %s695_s3 = inlined_call_operand.vmem [shape: f32[4,1,128], index: 3, kind: input, shape index: {}]   ;;  %s696_s4 = inlined_call_operand.hbm [shape: f32[32,128], index: 4, kind: output, shape index: {}]  }
   0x1   :  { %10 = vsyncpa [#allocation5], 0  ;;  %s630_s15 = smov [#allocation3]  }
   0x2   :  { %s20_s16 = sshll.u32 %s630_s15, 4  ;;  %s21_s16 = int_to_ptr.vmem [resolvable:$true] %s20_s16 }
   0x3   :  { %s594_s17 = scalar_lea.vmem %s21_s16, 4096  ;;  %p599_p1 = scmp.lt.s32.totalorder %s21_s16, %s21_s16 }
   0x4   :  { %p595_p0 = scmp.ne.s32.totalorder %s21_s16, %s594_s17  ;;  %p600_p2 = scmp.lt.s32.totalorder %s594_s17, %s594_s17 }
   0x6   :  { %p601_p3 = por %p600_p2, %p599_p1 }
   0x8   :  { %p602_p4 = pnand %p601_p3, %p595_p0 }
   0xa   :  { %605 = shalt.err (!%p602_p4)
}
   0xb   :  { %s631_s18 = smov 256   ;;  %s632_s19 = smov 16  }
   0xc   :  { %26 = dma.hbm_to_vmem [thread:$0]  %s694_s2, 4096, %s21_s16, [#allocation4], %s631_s18, %s631_s18, %s632_s19  }
   0xd   :  { %626 = dma.done.wait [#allocation4], 4096  }
   0xe   :  { %627 = vsyncadd [#allocation4], 4294963200  ;;  %v49_v0 = vld [vmem:[%s692_s0] sm:$0xff]  ;;  %v50_v1 = vld [vmem:[%s692_s0 + $0x8] sm:$0xff]  ;;  %vm62_vm0 = vcmask 130048   ;;  %v633_v37 = vmov 0  }
   0xf   :  { %v51_v2 = vpack.c.bf16 %v50_v1, %v49_v0  ;;  %v536_v3 = vld [vmem:[%s693_s1] sm:$0xff]   ;;  %v537_v4 = vld [vmem:[%s693_s1 + $0x8] sm:$0xff]   ;;  %359 = vmatprep.mubr.bf16.mxu1 %v633_v37  ;;  %s634_s7 = smov [#allocation6]  }
  0x10   :  { %525 = vmatprep.mubr.msk.bf16.mxu0 %vm62_vm0, %v536_v3  ;;  %v538_v5 = vld [vmem:[#allocation3 + $0xe4] ss:$16 sps:$4 sm:$0xff]   ;;  %v540_v6 = vld [vmem:[#allocation3 + $0xe8] ss:$16 sps:$4 sm:$0xff]   ;;  %v542_v7 = vld [vmem:[#allocation3 + $0xec] ss:$16 sps:$4 sm:$0xff]  }
  0x11   :  { %523 = vmatprep.subr.bf16.mxu0 %v51_v2  ;;  %327 = vmatprep.subr.bf16.mxu1 %v538_v5  ;;  %v543_v8 = vld [vmem:[#allocation3 + $0xe0] ss:$16 sps:$4 sm:$0xff]   ;;  %v544_v9 = vld [vmem:[#allocation3 + $0xc4] ss:$16 sps:$4 sm:$0xff]   ;;  %v546_v10 = vld [vmem:[#allocation3 + $0xc8] ss:$16 sps:$4 sm:$0xff]  }
  0x12   :  { %524 = vmatpush3.bf16.msra.mxu0 %v51_v2  ;;  %328 = vmatpush1.bf16.msra.mxu1 %v543_v8  ;;  %v548_v11 = vld [vmem:[#allocation3 + $0xcc] ss:$16 sps:$4 sm:$0xff]   ;;  %v549_v12 = vld [vmem:[#allocation3 + $0xc0] ss:$16 sps:$4 sm:$0xff]   ;;  %v550_v13 = vld [vmem:[#allocation3 + $0xa4] ss:$16 sps:$4 sm:$0xff]  }
  0x13   :  { %374 = vmatprep.subr.bf16.mxu0 %v542_v7  ;;  %329 = vmatprep.subr.bf16.mxu1 %v544_v9  ;;  %v554_v14 = vld [vmem:[#allocation3 + $0xac] ss:$16 sps:$4 sm:$0xff]   ;;  %v555_v15 = vld [vmem:[#allocation3 + $0xa0] ss:$16 sps:$4 sm:$0xff]   ;;  %v552_v16 = vld [vmem:[#allocation3 + $0xa8] ss:$16 sps:$4 sm:$0xff]  }
  0x14   :  { %v556_v17 = vld [vmem:[#allocation3 + $0x84] ss:$16 sps:$4 sm:$0xff]   ;;  %v560_v18 = vld [vmem:[#allocation3 + $0x8c] ss:$16 sps:$4 sm:$0xff]   ;;  %v558_v19 = vld [vmem:[#allocation3 + $0x88] ss:$16 sps:$4 sm:$0xff]  }
  0x15   :  { %526 = vmatmul.mubr.msk.bf16.vlgmr.msra.gmra.mxu0 %vm62_vm0, %v537_v4  ;;  %v561_v20 = vld [vmem:[#allocation3 + $0x80] ss:$16 sps:$4 sm:$0xff]   ;;  %v562_v21 = vld [vmem:[#allocation3 + $0x64] ss:$16 sps:$4 sm:$0xff]   ;;  %v566_v22 = vld [vmem:[#allocation3 + $0x6c] ss:$16 sps:$4 sm:$0xff]  }
  0x16   :  { %375 = vmatpush1.bf16.msra.mxu0 %v540_v6  ;;  %330 = vmatpush1.bf16.msra.mxu1 %v549_v12  ;;  %v564_v23 = vld [vmem:[#allocation3 + $0x68] ss:$16 sps:$4 sm:$0xff]   ;;  %v567_v24 = vld [vmem:[#allocation3 + $0x60] ss:$16 sps:$4 sm:$0xff]   ;;  %v568_v25 = vld [vmem:[#allocation3 + $0x44] ss:$16 sps:$4 sm:$0xff]  }
  0x17   :  { %376 = vmatprep.subr.bf16.mxu0 %v548_v11  ;;  %331 = vmatprep.subr.bf16.mxu1 %v550_v13  ;;  %v572_v26 = vld [vmem:[#allocation3 + $0x4c] ss:$16 sps:$4 sm:$0xff]   ;;  %v573_v27 = vld [vmem:[#allocation3 + $0x40] ss:$16 sps:$4 sm:$0xff]   ;;  %v570_v28 = vld [vmem:[#allocation3 + $0x48] ss:$16 sps:$4 sm:$0xff]  }
  0x18   :  { %v574_v29 = vld [vmem:[#allocation3 + $0x24] ss:$16 sps:$4 sm:$0xff]   ;;  %v578_v30 = vld [vmem:[#allocation3 + $0x2c] ss:$16 sps:$4 sm:$0xff]   ;;  %v576_v31 = vld [vmem:[#allocation3 + $0x28] ss:$16 sps:$4 sm:$0xff]   ;;  %406 = vmatprep.mubr.bf16.mxu0 %v633_v37 }
  0x19   :  { %v579_v32 = vld [vmem:[#allocation3 + $0x20] ss:$16 sps:$4 sm:$0xff]   ;;  %v580_v33 = vld [vmem:[#allocation3 + $0x4] ss:$16 sps:$4 sm:$0xff]   ;;  %v584_v34 = vld [vmem:[#allocation3 + $0xc] ss:$16 sps:$4 sm:$0xff]  }
  0x1a   :  { %377 = vmatpush1.bf16.msra.mxu0 %v546_v10  ;;  %332 = vmatpush1.bf16.msra.mxu1 %v555_v15  ;;  %v582_v35 = vld [vmem:[#allocation3 + $0x8] ss:$16 sps:$4 sm:$0xff]   ;;  %v585_v36 = vld [vmem:[#allocation3] ss:$16 sps:$4 sm:$0xff]   ;;  %s465_s8 = sshll.u32 %s634_s7, 4  ;;  %s466_s8 = int_to_ptr.vmem [resolvable:$true] %s465_s8 }
  0x1b   :  { %378 = vmatprep.subr.bf16.mxu0 %v554_v14  ;;  %333 = vmatprep.subr.bf16.mxu1 %v556_v17  ;;  %v513_v44 = vld [vmem:[%s695_s3] ss:$0 sm:$0xff]  ;;  %v515_v52 = vld [vmem:[%s695_s3 + $0x1] ss:$0 sm:$0xff]  ;;  %v517_v55 = vld [vmem:[%s695_s3 + $0x2] ss:$0 sm:$0xff]  ;;  %p611_p6 = scmp.lt.s32.totalorder %s466_s8, %s466_s8 }
  0x1c   :  { %v519_v0 = vld [vmem:[%s695_s3 + $0x3] ss:$0 sm:$0xff]  ;;  %s606_s11 = scalar_lea.vmem %s466_s8, 512 }
  0x1d   :  { %p607_p5 = scmp.ne.s32.totalorder %s466_s8, %s606_s11  ;;  %p612_p7 = scmp.lt.s32.totalorder %s606_s11, %s606_s11 }
  0x1e   :  { %379 = vmatpush1.bf16.msra.mxu0 %v552_v16  ;;  %334 = vmatpush1.bf16.msra.mxu1 %v561_v20 }
  0x1f   :  { %380 = vmatprep.subr.bf16.mxu0 %v560_v18  ;;  %335 = vmatprep.subr.bf16.mxu1 %v562_v21  ;;  %p613_p8 = por %p612_p7, %p611_p6 }
  0x21   :  { %p614_p9 = pnand %p613_p8, %p607_p5 }
  0x22   :  { %381 = vmatpush1.bf16.msra.mxu0 %v558_v19  ;;  %336 = vmatpush1.bf16.msra.mxu1 %v567_v24 }
  0x23   :  { %382 = vmatprep.subr.bf16.mxu0 %v566_v22  ;;  %337 = vmatprep.subr.bf16.mxu1 %v568_v25 }
  0x26   :  { %383 = vmatpush1.bf16.msra.mxu0 %v564_v23  ;;  %338 = vmatpush1.bf16.msra.mxu1 %v573_v27 }
  0x27   :  { %384 = vmatprep.subr.bf16.mxu0 %v572_v26  ;;  %339 = vmatprep.subr.bf16.mxu1 %v574_v29 }
  0x2a   :  { %385 = vmatpush1.bf16.msra.mxu0 %v570_v28  ;;  %340 = vmatpush1.bf16.msra.mxu1 %v579_v32 }
  0x2b   :  { %386 = vmatprep.subr.bf16.mxu0 %v578_v30  ;;  %341 = vmatprep.subr.bf16.mxu1 %v580_v33 }
  0x2e   :  { %387 = vmatpush1.bf16.msra.mxu0 %v576_v31  ;;  %342 = vmatpush1.bf16.msra.mxu1 %v585_v36 }
  0x2f   :  { %388 = vmatprep.subr.bf16.mxu0 %v584_v34 }
  0x32   :  { %389 = vmatpush1.bf16.msra.mxu0 %v582_v35 }
  0xd5   :  { %v527_v38 = vpop.f32.mrf.mxu0 }
  0xd7   :  { %v103_v39 = vpop.f32.mrf.mxu0 }
  0xd9   :  { %v528_v40 = vpop.f32.mrf.mxu0 }
  0xda   :  { %v134_v43 = vpack.c.bf16 %v528_v40, %v527_v38 }
  0xdb   :  { %v106_v41 = vpop.f32.mrf.mxu0 }
  0xdc   :  { %v133_v42 = vpack.c.bf16 %v106_v41, %v103_v39 }
  0xde   :  { %360 = vmatmul.mubr.bf16.vlgmr.msra.gmra.mxu1 %v133_v42  ;;  %407 = vmatmul.mubr.bf16.vlgmr.msra.gmra.mxu0 %v133_v42 }
  0xdf   :  { %367 = vmatprep.mubr.bf16.mxu1 %v633_v37  ;;  %412 = vmatprep.mubr.bf16.mxu0 %v633_v37 }
  0xe6   :  { %368 = vmatmul.mubr.bf16.gmra.mxu1 %v134_v43  ;;  %413 = vmatmul.mubr.bf16.gmra.mxu0 %v134_v43 }
 0x19e   :  { %v361_v45 = vpop.f32.mrf.mxu1  ;;  %v408_v46 = vpop.f32.mrf.mxu0 }
 0x19f   :  { %v428_v47 = vadd.f32 %v513_v44, %v361_v45 }
 0x1a0   :  { %v363_v48 = vpop.f32.mrf.mxu1  ;;  %v409_v49 = vpop.f32.mrf.mxu0 }
 0x1a1   :  { %429 = vst [vmem:[#allocation6] sm:$0xff] %v428_v47 }
 0x1a2   :  { %v364_v50 = vpop.f32.mrf.mxu1  ;;  %v410_v51 = vpop.f32.mrf.mxu0 }
 0x1a4   :  { %v365_v53 = vpop.f32.mrf.mxu1  ;;  %v411_v54 = vpop.f32.mrf.mxu0 }
 0x1a5   :  { %v438_v56 = vadd.f32 %v515_v52, %v365_v53 }
 0x1a6   :  { %v369_v57 = vpop.f32.mrf.mxu1  ;;  %v414_v58 = vpop.f32.mrf.mxu0 }
 0x1a7   :  { %439 = vst [vmem:[#allocation6 + $0x8] sm:$0xff] %v438_v56  ;;  %v448_v59 = vadd.f32 %v517_v55, %v414_v58 }
 0x1a8   :  { %v370_v60 = vpop.f32.mrf.mxu1  ;;  %v416_v61 = vpop.f32.mrf.mxu0 }
 0x1a9   :  { %449 = vst [vmem:[#allocation6 + $0x10] sm:$0xff] %v448_v59 }
 0x1aa   :  { %v371_v62 = vpop.f32.mrf.mxu1  ;;  %v417_v63 = vpop.f32.mrf.mxu0 }
 0x1ac   :  { %v372_v1 = vpop.f32.mrf.mxu1  ;;  %v418_v2 = vpop.f32.mrf.mxu0 }
 0x1ad   :  { %v458_v3 = vadd.f32 %v519_v0, %v418_v2 }
 0x1af   :  { %459 = vst [vmem:[#allocation6 + $0x18] sm:$0xff] %v458_v3 }
 0x1b0   :  { %617 = shalt.err (!%p614_p9)
}
 0x1b1   :  { %s635_s12 = smov 128   ;;  %s636_s13 = smov 8  }
 0x1b2   :  { %471 = dma.vmem_to_hbm [thread:$0]  %s466_s8, 512, %s696_s4, [#allocation5], %s635_s12, %s635_s12, %s636_s13  }
 0x1b3   :  { %628 = dma.done.wait [#allocation5], 512  }
 0x1b4   :  { %629 = vsyncadd [#allocation5], 4294966784 }
 0x1b5   :  { %475 = vsyncpa [#allocation4], 1 }
 0x1b6   :  { %476 = vsyncpa [#allocation5], 1 }

</bundles_post_ra>
